<compile_context>
chip_gen: v5e
topology: v5e:2x2
jax: 0.10.0
libtpu: 0.0.40
codegen_flags: <defaults>
</compile_context>

<pallas_src>
import math
import jax
import jax.numpy as jnp
from jax.experimental import pallas as pl
from jax.experimental.pallas import tpu as pltpu

# ----- synthetic tiny-BERT config -----
VOCAB = 64
HIDDEN = 32
HEADS = 2
HEAD_DIM = HIDDEN // HEADS
FFN = 64
NUM_LAYERS = 2
MAX_POS = 16
TYPE_VOCAB = 2
LN_EPS = 1e-12

PAD_IDX = 0
CLS_IDX = 2
SEP_IDX = 3

LAYER_INDICES = [-1]          # corresponds to layers='-1' (last encoder layer)

B = 2
S = 8

# packed per-layer vector slab: [L, VEC_ROWS, VEC_W]
VEC_ROWS = 8
VEC_W = 3 * HIDDEN            # widest packed row (bqkv)
R_BQKV, R_B1, R_BO, R_G1, R_BE1, R_B2, R_G2, R_BE2 = range(VEC_ROWS)


def _layer_norm(x, g, b):
    # one-pass mean / mean-of-squares: halves the cross-lane reduce count
    mu = jnp.mean(x, axis=-1, keepdims=True)
    ms = jnp.mean(x * x, axis=-1, keepdims=True)
    var = ms - mu * mu
    return (x - mu) * jax.lax.rsqrt(var + LN_EPS) * g + b


# ---------------------------------------------------------------------------
# Fused kernel. Grid = (batch, layer):
#   batch axis  -> "parallel"  (independent rows; shards across TCs on v7x)
#   layer axis  -> "arbitrary" (sequential dependence through o_ref)
# o_ref's block index is constant along the layer axis, so the hidden state
# stays VMEM-resident across layers; next layer's weights auto double-buffer.
# ---------------------------------------------------------------------------
def _bert_fused_kernel(emb_ref, bias_ref, eg_ref, eb_ref,
                       wqkv_ref, wo_ref, w1_ref, w2_ref, vec_ref,
                       o_ref):
    l = pl.program_id(1)

    @pl.when(l == 0)
    def _():
        # BERT embeddings: LayerNorm(word + pos + type)  (sum done in wrapper)
        o_ref[...] = _layer_norm(emb_ref[...], eg_ref[...], eb_ref[...])

    x = o_ref[...]                                   # [S, H] f32 resident state

    # unpack the per-layer vector slab (one DMA instead of eight)
    vecs = vec_ref[...]                              # [8, 3H] f32
    bqkv = vecs[R_BQKV:R_BQKV + 1, :]                # [1, 3H]
    b1 = vecs[R_B1:R_B1 + 1, 0:FFN]                  # [1, FFN]
    bo = vecs[R_BO:R_BO + 1, 0:HIDDEN]
    g1 = vecs[R_G1:R_G1 + 1, 0:HIDDEN]
    be1 = vecs[R_BE1:R_BE1 + 1, 0:HIDDEN]
    b2 = vecs[R_B2:R_B2 + 1, 0:HIDDEN]
    g2 = vecs[R_G2:R_G2 + 1, 0:HIDDEN]
    be2 = vecs[R_BE2:R_BE2 + 1, 0:HIDDEN]

    # fused QKV projection (bf16 MXU, f32 accumulate); 1/sqrt(Dh) is already
    # folded into the Q columns of wqkv / bqkv at init time.
    xb = x.astype(jnp.bfloat16)
    qkv = jnp.dot(xb, wqkv_ref[...],
                  preferred_element_type=jnp.float32) + bqkv
    q = qkv[:, 0:HIDDEN]
    k = qkv[:, HIDDEN:2 * HIDDEN]
    v = qkv[:, 2 * HIDDEN:3 * HIDDEN]

    key_bias = bias_ref[...]                         # [1, S]: -1e4 on pad keys

    # per-batch, per-head attention on [S, S] scores; the head concat is folded
    # into the output projection by accumulating through row-slices of Wo.
    wo = wo_ref[...]                                 # [H, H] bf16
    attn = jnp.zeros((S, HIDDEN), jnp.float32)
    for h in range(HEADS):
        c0, c1 = h * HEAD_DIM, (h + 1) * HEAD_DIM
        qh = q[:, c0:c1].astype(jnp.bfloat16)        # [S, Dh]
        kh = k[:, c0:c1].astype(jnp.bfloat16)
        vh = v[:, c0:c1].astype(jnp.bfloat16)
        s = jax.lax.dot_general(qh, kh, (((1,), (1,)), ((), ())),
                                preferred_element_type=jnp.float32)
        s = s + key_bias
        s = s - jnp.max(s, axis=-1, keepdims=True)
        p = jnp.exp(s)
        p = p * pl.reciprocal(jnp.sum(p, axis=-1, keepdims=True), approx=True)
        ctx_h = jnp.dot(p.astype(jnp.bfloat16), vh,
                        preferred_element_type=jnp.float32)      # [S, Dh]
        attn = attn + jnp.dot(ctx_h.astype(jnp.bfloat16), wo[c0:c1, :],
                              preferred_element_type=jnp.float32)
    attn = attn + bo

    h1 = _layer_norm(x + attn, g1, be1)

    ff = jnp.dot(h1.astype(jnp.bfloat16), w1_ref[...],
                 preferred_element_type=jnp.float32) + b1
    # TODO(synk): BERT uses exact erf-GELU; tanh-approx GELU used for safe TPU lowering.
    ff = jax.nn.gelu(ff, approximate=True)
    ff = jnp.dot(ff.astype(jnp.bfloat16), w2_ref[...],
                 preferred_element_type=jnp.float32) + b2
    o_ref[...] = _layer_norm(h1 + ff, g2, be2)


# ---------------------------------------------------------------------------
# Parameter init (deterministic, synthetic); per-layer weights stacked on L,
# weights in bf16, small per-layer vectors packed into one [L, 8, 3H] slab.
# ---------------------------------------------------------------------------
def init_params(key):
    std = 0.02
    keys = jax.random.split(key, 7)
    L = NUM_LAYERS

    wqkv = jax.random.normal(keys[3], (L, HIDDEN, 3 * HIDDEN), jnp.float32) * std
    bqkv = jnp.zeros((L, 3 * HIDDEN), jnp.float32)
    # one-time weight transform: fold 1/sqrt(HEAD_DIM) into the Q projection
    scale = 1.0 / math.sqrt(HEAD_DIM)
    wqkv = wqkv.at[:, :, :HIDDEN].multiply(scale)
    bqkv = bqkv.at[:, :HIDDEN].multiply(scale)

    bo = jnp.zeros((L, HIDDEN), jnp.float32)
    ln1_g = jnp.ones((L, HIDDEN), jnp.float32)
    ln1_b = jnp.zeros((L, HIDDEN), jnp.float32)
    b1 = jnp.zeros((L, FFN), jnp.float32)
    b2 = jnp.zeros((L, HIDDEN), jnp.float32)
    ln2_g = jnp.ones((L, HIDDEN), jnp.float32)
    ln2_b = jnp.zeros((L, HIDDEN), jnp.float32)

    def pad_row(v):                                   # [L, d] -> [L, VEC_W]
        return jnp.pad(v, ((0, 0), (0, VEC_W - v.shape[1])))

    # row order must match R_* indices used inside the kernel
    vecs = jnp.stack([pad_row(bqkv), pad_row(b1), pad_row(bo),
                      pad_row(ln1_g), pad_row(ln1_b), pad_row(b2),
                      pad_row(ln2_g), pad_row(ln2_b)], axis=1)   # [L, 8, 3H]

    return {
        "word_emb": jax.random.normal(keys[0], (VOCAB, HIDDEN), jnp.float32) * std,
        "pos_emb": jax.random.normal(keys[1], (MAX_POS, HIDDEN), jnp.float32) * std,
        "type_emb": jax.random.normal(keys[2], (TYPE_VOCAB, HIDDEN), jnp.float32) * std,
        "emb_ln_g": jnp.ones((1, HIDDEN), jnp.float32),
        "emb_ln_b": jnp.zeros((1, HIDDEN), jnp.float32),
        "wqkv": wqkv.astype(jnp.bfloat16),
        "wo": (jax.random.normal(keys[4], (L, HIDDEN, HIDDEN), jnp.float32) * std
               ).astype(jnp.bfloat16),
        "w1": (jax.random.normal(keys[5], (L, HIDDEN, FFN), jnp.float32) * std
               ).astype(jnp.bfloat16),
        "w2": (jax.random.normal(keys[6], (L, FFN, HIDDEN), jnp.float32) * std
               ).astype(jnp.bfloat16),
        "vecs": vecs,                                  # f32 (added to f32 accums)
    }


# ---------------------------------------------------------------------------
# Wrapper: BertWordPieceEncoder.forward
# ---------------------------------------------------------------------------
def bert_wordpiece_encoder_forward(params, word_pieces, token_type_ids=None):
    b_, s_ = word_pieces.shape
    assert (b_, s_) == (B, S)
    word_pieces = word_pieces.astype(jnp.int32)

    # 1) token_type_ids: integer reverse cumsum of sep mask, mod 2, optional flip.
    #    Plain JAX -- a dedicated kernel launch for a [B,S] int op is pure overhead.
    if token_type_ids is None:
        sep = (word_pieces == SEP_IDX).astype(jnp.int32)
        rc = jnp.cumsum(sep[:, ::-1], axis=-1)[:, ::-1]          # reverse cumsum
        tt = rc % 2
        # NOTE: flip decided solely from element [0,0] and applied to all rows,
        # matching fastNLP's batch-global behavior. Intentional.
        token_type_ids = jnp.where(tt[0, 0] != 0, 1 - tt, tt)
    token_type_ids = token_type_ids.astype(jnp.int32)

    # 2) drop_word: identity (word_dropout == 0 / eval mode)

    # 3) embedding gathers (XLA glue), pre-summed to a single [B*S, H] kernel input
    we = jnp.take(params["word_emb"], word_pieces.reshape(-1), axis=0)
    pe = jnp.tile(params["pos_emb"][:S], (B, 1))
    te = jnp.take(params["type_emb"], token_type_ids.reshape(-1), axis=0)
    emb = (we + pe + te).astype(jnp.float32)                     # [B*S, H]

    # pad-key bias, per batch: [B, 1, S], f32 (kept f32: -1e4 must not be
    # squashed by bf16). No O((B*S)^2) array anywhere.
    key_mask = (word_pieces != PAD_IDX)
    pad_bias = jnp.where(key_mask, 0.0, -10000.0).astype(jnp.float32)
    pad_bias = pad_bias.reshape(B, 1, S)

    shared2 = lambda b, l: (0, 0)         # shared across the whole grid
    per_batch2 = lambda b, l: (b, 0)      # hidden-state / embedding blocks
    per_batch3 = lambda b, l: (b, 0, 0)
    per_layer3 = lambda b, l: (l, 0, 0)   # layer-stacked weights

    h_last = pl.pallas_call(
        _bert_fused_kernel,
        out_shape=jax.ShapeDtypeStruct((B * S, HIDDEN), jnp.float32),
        grid_spec=pltpu.PrefetchScalarGridSpec(
            num_scalar_prefetch=0,
            grid=(B, NUM_LAYERS),
            in_specs=[
                pl.BlockSpec((S, HIDDEN), per_batch2),                          # emb
                pl.BlockSpec((pl.Squeezed(), 1, S), per_batch3),                # pad-key bias
                pl.BlockSpec((1, HIDDEN), shared2),                             # emb ln g
                pl.BlockSpec((1, HIDDEN), shared2),                             # emb ln b
                pl.BlockSpec((pl.Squeezed(), HIDDEN, 3 * HIDDEN), per_layer3),  # wqkv (bf16)
                pl.BlockSpec((pl.Squeezed(), HIDDEN, HIDDEN), per_layer3),      # wo   (bf16)
                pl.BlockSpec((pl.Squeezed(), HIDDEN, FFN), per_layer3),         # w1   (bf16)
                pl.BlockSpec((pl.Squeezed(), FFN, HIDDEN), per_layer3),         # w2   (bf16)
                pl.BlockSpec((pl.Squeezed(), VEC_ROWS, VEC_W), per_layer3),     # packed vectors
            ],
            # constant block index along the layer axis -> hidden state resident
            out_specs=pl.BlockSpec((S, HIDDEN), per_batch2),
        ),
        compiler_params=pltpu.CompilerParams(
            # batch axis parallel (uses 2nd TC on v7x); layer axis sequential
            dimension_semantics=("parallel", "arbitrary")),
    )(emb, pad_bias, params["emb_ln_g"], params["emb_ln_b"],
      params["wqkv"], params["wo"], params["w1"], params["w2"], params["vecs"])

    hidden = h_last.reshape(B, S, HIDDEN)
    # layers='-1' -> last encoder layer only (the fused kernel keeps only the
    # final layer resident; other layer selections would need extra outputs).
    out = jnp.concatenate([hidden for _ in LAYER_INDICES], axis=-1)

    # nn.Dropout(p=0.0) in eval mode -> identity
    return out


if __name__ == "__main__":
    key = jax.random.PRNGKey(0)
    k_params, k_tok = jax.random.split(key)
    params = init_params(k_params)

    # word_pieces: batch_size x max_len, containing [CLS]/[SEP]/[PAD] + tokens
    word_pieces = jax.random.randint(k_tok, (B, S), 4, VOCAB).astype(jnp.int32)
    word_pieces = word_pieces.at[:, 0].set(CLS_IDX)
    word_pieces = word_pieces.at[0, 3].set(SEP_IDX)
    word_pieces = word_pieces.at[0, S - 1].set(SEP_IDX)
    word_pieces = word_pieces.at[1, 4].set(SEP_IDX)
    word_pieces = word_pieces.at[1, 5].set(SEP_IDX)
    word_pieces = word_pieces.at[1, 6:].set(PAD_IDX)

    out = bert_wordpiece_encoder_forward(params, word_pieces)
    out = jax.block_until_ready(out)

    assert out.shape == (B, S, len(LAYER_INDICES) * HIDDEN)
    assert out.dtype == jnp.float32
    assert bool(jnp.all(jnp.isfinite(out)))
    print("KERNEL_OK")
</pallas_src>

<mosaic_0001>
module attributes {stable_mosaic.version = 11 : i64} {
  func.func @_bert_fused_kernel(%arg0: i32, %arg1: i32, %arg2: memref<8x32xf32, #tpu.memory_space<vmem>>, %arg3: memref<1x1x8xf32, #tpu.memory_space<vmem>>, %arg4: memref<1x32xf32, #tpu.memory_space<vmem>>, %arg5: memref<1x32xf32, #tpu.memory_space<vmem>>, %arg6: memref<1x32x96xbf16, #tpu.memory_space<vmem>>, %arg7: memref<1x32x32xbf16, #tpu.memory_space<vmem>>, %arg8: memref<1x32x64xbf16, #tpu.memory_space<vmem>>, %arg9: memref<1x64x32xbf16, #tpu.memory_space<vmem>>, %arg10: memref<1x8x96xf32, #tpu.memory_space<vmem>>, %arg11: memref<8x32xf32, #tpu.memory_space<vmem>>) attributes {dimension_semantics = [#tpu.dimension_semantics<parallel>, #tpu.dimension_semantics<arbitrary>], iteration_bounds = array<i64: 2, 2>, scalar_prefetch = 0 : i64, scratch_operands = 0 : i64, tpu.core_type = #tpu.core_type<tc>, window_params = [{transform_indices = @transform_0, window_bounds = array<i64: 8, 32>}, {transform_indices = @transform_1, window_bounds = array<i64: 1, 1, 8>}, {pipeline_mode = #tpu.pipeline_mode<synchronous>, transform_indices = @transform_2, window_bounds = array<i64: 1, 32>}, {pipeline_mode = #tpu.pipeline_mode<synchronous>, transform_indices = @transform_3, window_bounds = array<i64: 1, 32>}, {transform_indices = @transform_4, window_bounds = array<i64: 1, 32, 96>}, {transform_indices = @transform_5, window_bounds = array<i64: 1, 32, 32>}, {transform_indices = @transform_6, window_bounds = array<i64: 1, 32, 64>}, {transform_indices = @transform_7, window_bounds = array<i64: 1, 64, 32>}, {transform_indices = @transform_8, window_bounds = array<i64: 1, 8, 96>}, {transform_indices = @transform_9, window_bounds = array<i64: 8, 32>}]} {
    %c0_i32 = arith.constant 0 : i32
    %0 = arith.cmpi eq, %arg1, %c0_i32 : i32
    %1 = arith.extui %0 : i1 to i32
    %c0_i32_0 = arith.constant 0 : i32
    %2 = arith.cmpi ne, %1, %c0_i32_0 : i32
    scf.if %2 {
      %c0_49 = arith.constant 0 : index
      %c0_50 = arith.constant 0 : index
      %152 = vector.load %arg2[%c0_49, %c0_50] : memref<8x32xf32, #tpu.memory_space<vmem>>, vector<8x32xf32>
      %c0_51 = arith.constant 0 : index
      %c0_52 = arith.constant 0 : index
      %153 = vector.load %arg4[%c0_51, %c0_52] : memref<1x32xf32, #tpu.memory_space<vmem>>, vector<1x32xf32>
      %c0_53 = arith.constant 0 : index
      %c0_54 = arith.constant 0 : index
      %154 = vector.load %arg5[%c0_53, %c0_54] : memref<1x32xf32, #tpu.memory_space<vmem>>, vector<1x32xf32>
      %cst_55 = arith.constant dense<0.000000e+00> : vector<8xf32>
      %155 = vector.multi_reduction <add>, %152, %cst_55 [1] : vector<8x32xf32> to vector<8xf32>
      %156 = vector.shape_cast %155 : vector<8xf32> to vector<8x1xf32>
      %cst_56 = arith.constant 3.200000e+01 : f32
      %157 = vector.broadcast %cst_56 : f32 to vector<8x1xf32>
      %158 = arith.divf %156, %157 : vector<8x1xf32>
      %159 = arith.mulf %152, %152 : vector<8x32xf32>
      %cst_57 = arith.constant dense<0.000000e+00> : vector<8xf32>
      %160 = vector.multi_reduction <add>, %159, %cst_57 [1] : vector<8x32xf32> to vector<8xf32>
      %161 = vector.shape_cast %160 : vector<8xf32> to vector<8x1xf32>
      %cst_58 = arith.constant 3.200000e+01 : f32
      %162 = vector.broadcast %cst_58 : f32 to vector<8x1xf32>
      %163 = arith.divf %161, %162 : vector<8x1xf32>
      %164 = arith.mulf %158, %158 : vector<8x1xf32>
      %165 = arith.subf %163, %164 : vector<8x1xf32>
      %166 = vector.broadcast %158 : vector<8x1xf32> to vector<8x32xf32>
      %167 = arith.subf %152, %166 : vector<8x32xf32>
      %cst_59 = arith.constant 9.99999996E-13 : f32
      %168 = vector.broadcast %cst_59 : f32 to vector<8x1xf32>
      %169 = arith.addf %165, %168 : vector<8x1xf32>
      %170 = math.rsqrt %169 : vector<8x1xf32>
      %171 = vector.broadcast %170 : vector<8x1xf32> to vector<8x32xf32>
      %172 = arith.mulf %167, %171 : vector<8x32xf32>
      %173 = vector.broadcast %153 : vector<1x32xf32> to vector<8x32xf32>
      %174 = arith.mulf %172, %173 : vector<8x32xf32>
      %175 = vector.broadcast %154 : vector<1x32xf32> to vector<8x32xf32>
      %176 = arith.addf %174, %175 : vector<8x32xf32>
      %c0_60 = arith.constant 0 : index
      %c0_61 = arith.constant 0 : index
      %177 = vector.load %arg11[%c0_60, %c0_61] : memref<8x32xf32, #tpu.memory_space<vmem>>, vector<8x32xf32>
      tpu.vector_store %arg11[%c0_60, %c0_61], %176 {strides = array<i32>} : memref<8x32xf32, #tpu.memory_space<vmem>>, vector<8x32xf32>,
    } else {
    }
    %c0 = arith.constant 0 : index
    %c0_1 = arith.constant 0 : index
    %3 = vector.load %arg11[%c0, %c0_1] : memref<8x32xf32, #tpu.memory_space<vmem>>, vector<8x32xf32>
    %c0_2 = arith.constant 0 : index
    %c0_3 = arith.constant 0 : index
    %c0_4 = arith.constant 0 : index
    %4 = vector.load %arg10[%c0_2, %c0_3, %c0_4] : memref<1x8x96xf32, #tpu.memory_space<vmem>>, vector<1x8x96xf32>
    %5 = vector.shape_cast %4 : vector<1x8x96xf32> to vector<8x96xf32>
    %6 = vector.extract_strided_slice %5 {offsets = [0, 0], sizes = [1, 96], strides = [1, 1]} : vector<8x96xf32> to vector<1x96xf32>
    %7 = vector.extract_strided_slice %5 {offsets = [1, 0], sizes = [1, 64], strides = [1, 1]} : vector<8x96xf32> to vector<1x64xf32>
    %8 = vector.extract_strided_slice %5 {offsets = [2, 0], sizes = [1, 32], strides = [1, 1]} : vector<8x96xf32> to vector<1x32xf32>
    %9 = vector.extract_strided_slice %5 {offsets = [3, 0], sizes = [1, 32], strides = [1, 1]} : vector<8x96xf32> to vector<1x32xf32>
    %10 = vector.extract_strided_slice %5 {offsets = [4, 0], sizes = [1, 32], strides = [1, 1]} : vector<8x96xf32> to vector<1x32xf32>
    %11 = vector.extract_strided_slice %5 {offsets = [5, 0], sizes = [1, 32], strides = [1, 1]} : vector<8x96xf32> to vector<1x32xf32>
    %12 = vector.extract_strided_slice %5 {offsets = [6, 0], sizes = [1, 32], strides = [1, 1]} : vector<8x96xf32> to vector<1x32xf32>
    %13 = vector.extract_strided_slice %5 {offsets = [7, 0], sizes = [1, 32], strides = [1, 1]} : vector<8x96xf32> to vector<1x32xf32>
    %14 = arith.truncf %3 : vector<8x32xf32> to vector<8x32xbf16>
    %c0_5 = arith.constant 0 : index
    %c0_6 = arith.constant 0 : index
    %c0_7 = arith.constant 0 : index
    %15 = vector.load %arg6[%c0_5, %c0_6, %c0_7] : memref<1x32x96xbf16, #tpu.memory_space<vmem>>, vector<1x32x96xbf16>
    %16 = vector.shape_cast %15 : vector<1x32x96xbf16> to vector<32x96xbf16>
    %cst = arith.constant dense<0.000000e+00> : vector<8x96xf32>
    %17 = tpu.matmul %14, %16, %cst {dimension_numbers = #tpu.dot_dimension_numbers<[1], [0], [0], [1], [0, 0, 1, 1], [], []>} : vector<8x32xbf16>, vector<32x96xbf16>, vector<8x96xf32> -> vector<8x96xf32>
    %18 = vector.broadcast %6 : vector<1x96xf32> to vector<8x96xf32>
    %19 = arith.addf %17, %18 : vector<8x96xf32>
    %20 = vector.extract_strided_slice %19 {offsets = [0, 0], sizes = [8, 32], strides = [1, 1]} : vector<8x96xf32> to vector<8x32xf32>
    %21 = vector.extract_strided_slice %19 {offsets = [0, 32], sizes = [8, 32], strides = [1, 1]} : vector<8x96xf32> to vector<8x32xf32>
    %22 = vector.extract_strided_slice %19 {offsets = [0, 64], sizes = [8, 32], strides = [1, 1]} : vector<8x96xf32> to vector<8x32xf32>
    %c0_8 = arith.constant 0 : index
    %c0_9 = arith.constant 0 : index
    %c0_10 = arith.constant 0 : index
    %23 = vector.load %arg3[%c0_8, %c0_9, %c0_10] : memref<1x1x8xf32, #tpu.memory_space<vmem>>, vector<1x1x8xf32>
    %24 = vector.shape_cast %23 : vector<1x1x8xf32> to vector<1x8xf32>
    %c0_11 = arith.constant 0 : index
    %c0_12 = arith.constant 0 : index
    %c0_13 = arith.constant 0 : index
    %25 = vector.load %arg7[%c0_11, %c0_12, %c0_13] : memref<1x32x32xbf16, #tpu.memory_space<vmem>>, vector<1x32x32xbf16>
    %26 = vector.shape_cast %25 : vector<1x32x32xbf16> to vector<32x32xbf16>
    %cst_14 = arith.constant 0.000000e+00 : f32
    %27 = vector.broadcast %cst_14 : f32 to vector<8x32xf32>
    %28 = vector.extract_strided_slice %20 {offsets = [0, 0], sizes = [8, 16], strides = [1, 1]} : vector<8x32xf32> to vector<8x16xf32>
    %29 = arith.truncf %28 : vector<8x16xf32> to vector<8x16xbf16>
    %30 = vector.extract_strided_slice %21 {offsets = [0, 0], sizes = [8, 16], strides = [1, 1]} : vector<8x32xf32> to vector<8x16xf32>
    %31 = arith.truncf %30 : vector<8x16xf32> to vector<8x16xbf16>
    %32 = vector.extract_strided_slice %22 {offsets = [0, 0], sizes = [8, 16], strides = [1, 1]} : vector<8x32xf32> to vector<8x16xf32>
    %33 = arith.truncf %32 : vector<8x16xf32> to vector<8x16xbf16>
    %cst_15 = arith.constant dense<0.000000e+00> : vector<8x8xf32>
    %34 = tpu.matmul %29, %31, %cst_15 {dimension_numbers = #tpu.dot_dimension_numbers<[1], [1], [0], [0], [0, 0, 1, 0], [], []>} : vector<8x16xbf16>, vector<8x16xbf16>, vector<8x8xf32> -> vector<8x8xf32>
    %35 = vector.broadcast %24 : vector<1x8xf32> to vector<8x8xf32>
    %36 = arith.addf %34, %35 : vector<8x8xf32>
    %cst_16 = arith.constant dense<0xFF800000> : vector<8xf32>
    %37 = vector.multi_reduction <maximumf>, %36, %cst_16 [1] : vector<8x8xf32> to vector<8xf32>
    %38 = vector.shape_cast %37 : vector<8xf32> to vector<8x1xf32>
    %39 = vector.broadcast %38 : vector<8x1xf32> to vector<8x8xf32>
    %40 = arith.subf %36, %39 : vector<8x8xf32>
    %41 = math.exp %40 : vector<8x8xf32>
    %cst_17 = arith.constant dense<0.000000e+00> : vector<8xf32>
    %42 = vector.multi_reduction <add>, %41, %cst_17 [1] : vector<8x8xf32> to vector<8xf32>
    %43 = vector.shape_cast %42 : vector<8xf32> to vector<8x1xf32>
    %44 = tpu.reciprocal %43 {approx = true} : vector<8x1xf32> -> vector<8x1xf32>
    %45 = vector.broadcast %44 : vector<8x1xf32> to vector<8x8xf32>
    %46 = arith.mulf %41, %45 : vector<8x8xf32>
    %47 = arith.truncf %46 : vector<8x8xf32> to vector<8x8xbf16>
    %cst_18 = arith.constant dense<0.000000e+00> : vector<8x16xf32>
    %48 = tpu.matmul %47, %33, %cst_18 {dimension_numbers = #tpu.dot_dimension_numbers<[1], [0], [0], [1], [0, 0, 1, 1], [], []>} : vector<8x8xbf16>, vector<8x16xbf16>, vector<8x16xf32> -> vector<8x16xf32>
    %49 = arith.truncf %48 : vector<8x16xf32> to vector<8x16xbf16>
    %50 = vector.extract_strided_slice %26 {offsets = [0, 0], sizes = [16, 32], strides = [1, 1]} : vector<32x32xbf16> to vector<16x32xbf16>
    %cst_19 = arith.constant dense<0.000000e+00> : vector<8x32xf32>
    %51 = tpu.matmul %49, %50, %cst_19 {dimension_numbers = #tpu.dot_dimension_numbers<[1], [0], [0], [1], [0, 0, 1, 1], [], []>} : vector<8x16xbf16>, vector<16x32xbf16>, vector<8x32xf32> -> vector<8x32xf32>
    %52 = arith.addf %27, %51 : vector<8x32xf32>
    %53 = vector.extract_strided_slice %20 {offsets = [0, 16], sizes = [8, 16], strides = [1, 1]} : vector<8x32xf32> to vector<8x16xf32>
    %54 = arith.truncf %53 : vector<8x16xf32> to vector<8x16xbf16>
    %55 = vector.extract_strided_slice %21 {offsets = [0, 16], sizes = [8, 16], strides = [1, 1]} : vector<8x32xf32> to vector<8x16xf32>
    %56 = arith.truncf %55 : vector<8x16xf32> to vector<8x16xbf16>
    %57 = vector.extract_strided_slice %22 {offsets = [0, 16], sizes = [8, 16], strides = [1, 1]} : vector<8x32xf32> to vector<8x16xf32>
    %58 = arith.truncf %57 : vector<8x16xf32> to vector<8x16xbf16>
    %cst_20 = arith.constant dense<0.000000e+00> : vector<8x8xf32>
    %59 = tpu.matmul %54, %56, %cst_20 {dimension_numbers = #tpu.dot_dimension_numbers<[1], [1], [0], [0], [0, 0, 1, 0], [], []>} : vector<8x16xbf16>, vector<8x16xbf16>, vector<8x8xf32> -> vector<8x8xf32>
    %60 = vector.broadcast %24 : vector<1x8xf32> to vector<8x8xf32>
    %61 = arith.addf %59, %60 : vector<8x8xf32>
    %cst_21 = arith.constant dense<0xFF800000> : vector<8xf32>
    %62 = vector.multi_reduction <maximumf>, %61, %cst_21 [1] : vector<8x8xf32> to vector<8xf32>
    %63 = vector.shape_cast %62 : vector<8xf32> to vector<8x1xf32>
    %64 = vector.broadcast %63 : vector<8x1xf32> to vector<8x8xf32>
    %65 = arith.subf %61, %64 : vector<8x8xf32>
    %66 = math.exp %65 : vector<8x8xf32>
    %cst_22 = arith.constant dense<0.000000e+00> : vector<8xf32>
    %67 = vector.multi_reduction <add>, %66, %cst_22 [1] : vector<8x8xf32> to vector<8xf32>
    %68 = vector.shape_cast %67 : vector<8xf32> to vector<8x1xf32>
    %69 = tpu.reciprocal %68 {approx = true} : vector<8x1xf32> -> vector<8x1xf32>
    %70 = vector.broadcast %69 : vector<8x1xf32> to vector<8x8xf32>
    %71 = arith.mulf %66, %70 : vector<8x8xf32>
    %72 = arith.truncf %71 : vector<8x8xf32> to vector<8x8xbf16>
    %cst_23 = arith.constant dense<0.000000e+00> : vector<8x16xf32>
    %73 = tpu.matmul %72, %58, %cst_23 {dimension_numbers = #tpu.dot_dimension_numbers<[1], [0], [0], [1], [0, 0, 1, 1], [], []>} : vector<8x8xbf16>, vector<8x16xbf16>, vector<8x16xf32> -> vector<8x16xf32>
    %74 = arith.truncf %73 : vector<8x16xf32> to vector<8x16xbf16>
    %75 = vector.extract_strided_slice %26 {offsets = [16, 0], sizes = [16, 32], strides = [1, 1]} : vector<32x32xbf16> to vector<16x32xbf16>
    %cst_24 = arith.constant dense<0.000000e+00> : vector<8x32xf32>
    %76 = tpu.matmul %74, %75, %cst_24 {dimension_numbers = #tpu.dot_dimension_numbers<[1], [0], [0], [1], [0, 0, 1, 1], [], []>} : vector<8x16xbf16>, vector<16x32xbf16>, vector<8x32xf32> -> vector<8x32xf32>
    %77 = arith.addf %52, %76 : vector<8x32xf32>
    %78 = vector.broadcast %8 : vector<1x32xf32> to vector<8x32xf32>
    %79 = arith.addf %77, %78 : vector<8x32xf32>
    %80 = arith.addf %3, %79 : vector<8x32xf32>
    %cst_25 = arith.constant dense<0.000000e+00> : vector<8xf32>
    %81 = vector.multi_reduction <add>, %80, %cst_25 [1] : vector<8x32xf32> to vector<8xf32>
    %82 = vector.shape_cast %81 : vector<8xf32> to vector<8x1xf32>
    %cst_26 = arith.constant 3.200000e+01 : f32
    %83 = vector.broadcast %cst_26 : f32 to vector<8x1xf32>
    %84 = arith.divf %82, %83 : vector<8x1xf32>
    %85 = arith.mulf %80, %80 : vector<8x32xf32>
    %cst_27 = arith.constant dense<0.000000e+00> : vector<8xf32>
    %86 = vector.multi_reduction <add>, %85, %cst_27 [1] : vector<8x32xf32> to vector<8xf32>
    %87 = vector.shape_cast %86 : vector<8xf32> to vector<8x1xf32>
    %cst_28 = arith.constant 3.200000e+01 : f32
    %88 = vector.broadcast %cst_28 : f32 to vector<8x1xf32>
    %89 = arith.divf %87, %88 : vector<8x1xf32>
    %90 = arith.mulf %84, %84 : vector<8x1xf32>
    %91 = arith.subf %89, %90 : vector<8x1xf32>
    %92 = vector.broadcast %84 : vector<8x1xf32> to vector<8x32xf32>
    %93 = arith.subf %80, %92 : vector<8x32xf32>
    %cst_29 = arith.constant 9.99999996E-13 : f32
    %94 = vector.broadcast %cst_29 : f32 to vector<8x1xf32>
    %95 = arith.addf %91, %94 : vector<8x1xf32>
    %96 = math.rsqrt %95 : vector<8x1xf32>
    %97 = vector.broadcast %96 : vector<8x1xf32> to vector<8x32xf32>
    %98 = arith.mulf %93, %97 : vector<8x32xf32>
    %99 = vector.broadcast %9 : vector<1x32xf32> to vector<8x32xf32>
    %100 = arith.mulf %98, %99 : vector<8x32xf32>
    %101 = vector.broadcast %10 : vector<1x32xf32> to vector<8x32xf32>
    %102 = arith.addf %100, %101 : vector<8x32xf32>
    %103 = arith.truncf %102 : vector<8x32xf32> to vector<8x32xbf16>
    %c0_30 = arith.constant 0 : index
    %c0_31 = arith.constant 0 : index
    %c0_32 = arith.constant 0 : index
    %104 = vector.load %arg8[%c0_30, %c0_31, %c0_32] : memref<1x32x64xbf16, #tpu.memory_space<vmem>>, vector<1x32x64xbf16>
    %105 = vector.shape_cast %104 : vector<1x32x64xbf16> to vector<32x64xbf16>
    %cst_33 = arith.constant dense<0.000000e+00> : vector<8x64xf32>
    %106 = tpu.matmul %103, %105, %cst_33 {dimension_numbers = #tpu.dot_dimension_numbers<[1], [0], [0], [1], [0, 0, 1, 1], [], []>} : vector<8x32xbf16>, vector<32x64xbf16>, vector<8x64xf32> -> vector<8x64xf32>
    %107 = vector.broadcast %7 : vector<1x64xf32> to vector<8x64xf32>
    %108 = arith.addf %106, %107 : vector<8x64xf32>
    %109 = arith.mulf %108, %108 : vector<8x64xf32>
    %110 = arith.mulf %108, %109 : vector<8x64xf32>
    %cst_34 = arith.constant 4.471500e-02 : f32
    %111 = vector.broadcast %cst_34 : f32 to vector<8x64xf32>
    %112 = arith.mulf %111, %110 : vector<8x64xf32>
    %113 = arith.addf %108, %112 : vector<8x64xf32>
    %cst_35 = arith.constant 0.797884583 : f32
    %114 = vector.broadcast %cst_35 : f32 to vector<8x64xf32>
    %115 = arith.mulf %114, %113 : vector<8x64xf32>
    %116 = math.tanh %115 : vector<8x64xf32>
    %cst_36 = arith.constant 1.000000e+00 : f32
    %117 = vector.broadcast %cst_36 : f32 to vector<8x64xf32>
    %118 = arith.addf %117, %116 : vector<8x64xf32>
    %cst_37 = arith.constant 5.000000e-01 : f32
    %119 = vector.broadcast %cst_37 : f32 to vector<8x64xf32>
    %120 = arith.mulf %119, %118 : vector<8x64xf32>
    %121 = arith.mulf %108, %120 : vector<8x64xf32>
    %122 = arith.truncf %121 : vector<8x64xf32> to vector<8x64xbf16>
    %c0_38 = arith.constant 0 : index
    %c0_39 = arith.constant 0 : index
    %c0_40 = arith.constant 0 : index
    %123 = vector.load %arg9[%c0_38, %c0_39, %c0_40] : memref<1x64x32xbf16, #tpu.memory_space<vmem>>, vector<1x64x32xbf16>
    %124 = vector.shape_cast %123 : vector<1x64x32xbf16> to vector<64x32xbf16>
    %cst_41 = arith.constant dense<0.000000e+00> : vector<8x32xf32>
    %125 = tpu.matmul %122, %124, %cst_41 {dimension_numbers = #tpu.dot_dimension_numbers<[1], [0], [0], [1], [0, 0, 1, 1], [], []>} : vector<8x64xbf16>, vector<64x32xbf16>, vector<8x32xf32> -> vector<8x32xf32>
    %126 = vector.broadcast %11 : vector<1x32xf32> to vector<8x32xf32>
    %127 = arith.addf %125, %126 : vector<8x32xf32>
    %128 = arith.addf %102, %127 : vector<8x32xf32>
    %cst_42 = arith.constant dense<0.000000e+00> : vector<8xf32>
    %129 = vector.multi_reduction <add>, %128, %cst_42 [1] : vector<8x32xf32> to vector<8xf32>
    %130 = vector.shape_cast %129 : vector<8xf32> to vector<8x1xf32>
    %cst_43 = arith.constant 3.200000e+01 : f32
    %131 = vector.broadcast %cst_43 : f32 to vector<8x1xf32>
    %132 = arith.divf %130, %131 : vector<8x1xf32>
    %133 = arith.mulf %128, %128 : vector<8x32xf32>
    %cst_44 = arith.constant dense<0.000000e+00> : vector<8xf32>
    %134 = vector.multi_reduction <add>, %133, %cst_44 [1] : vector<8x32xf32> to vector<8xf32>
    %135 = vector.shape_cast %134 : vector<8xf32> to vector<8x1xf32>
    %cst_45 = arith.constant 3.200000e+01 : f32
    %136 = vector.broadcast %cst_45 : f32 to vector<8x1xf32>
    %137 = arith.divf %135, %136 : vector<8x1xf32>
    %138 = arith.mulf %132, %132 : vector<8x1xf32>
    %139 = arith.subf %137, %138 : vector<8x1xf32>
    %140 = vector.broadcast %132 : vector<8x1xf32> to vector<8x32xf32>
    %141 = arith.subf %128, %140 : vector<8x32xf32>
    %cst_46 = arith.constant 9.99999996E-13 : f32
    %142 = vector.broadcast %cst_46 : f32 to vector<8x1xf32>
    %143 = arith.addf %139, %142 : vector<8x1xf32>
    %144 = math.rsqrt %143 : vector<8x1xf32>
    %145 = vector.broadcast %144 : vector<8x1xf32> to vector<8x32xf32>
    %146 = arith.mulf %141, %145 : vector<8x32xf32>
    %147 = vector.broadcast %12 : vector<1x32xf32> to vector<8x32xf32>
    %148 = arith.mulf %146, %147 : vector<8x32xf32>
    %149 = vector.broadcast %13 : vector<1x32xf32> to vector<8x32xf32>
    %150 = arith.addf %148, %149 : vector<8x32xf32>
    %c0_47 = arith.constant 0 : index
    %c0_48 = arith.constant 0 : index
    %151 = vector.load %arg11[%c0_47, %c0_48] : memref<8x32xf32, #tpu.memory_space<vmem>>, vector<8x32xf32>
    tpu.vector_store %arg11[%c0_47, %c0_48], %150 {strides = array<i32>} : memref<8x32xf32, #tpu.memory_space<vmem>>, vector<8x32xf32>,
    return
  }
  func.func @transform_0(%arg0: i32, %arg1: i32) -> (i32, i32) {
    %c0_i32 = arith.constant 0 : i32
    %c0_i32_0 = arith.constant 0 : i32
    return %arg0, %c0_i32 : i32, i32
  }
  func.func @transform_1(%arg0: i32, %arg1: i32) -> (i32, i32, i32) {
    %c0_i32 = arith.constant 0 : i32
    %c0_i32_0 = arith.constant 0 : i32
    %c0_i32_1 = arith.constant 0 : i32
    return %arg0, %c0_i32, %c0_i32_0 : i32, i32, i32
  }
  func.func @transform_2(%arg0: i32, %arg1: i32) -> (i32, i32) {
    %c0_i32 = arith.constant 0 : i32
    %c0_i32_0 = arith.constant 0 : i32
    %c0_i32_1 = arith.constant 0 : i32
    return %c0_i32, %c0_i32_0 : i32, i32
  }
  func.func @transform_3(%arg0: i32, %arg1: i32) -> (i32, i32) {
    %c0_i32 = arith.constant 0 : i32
    %c0_i32_0 = arith.constant 0 : i32
    %c0_i32_1 = arith.constant 0 : i32
    return %c0_i32, %c0_i32_0 : i32, i32
  }
  func.func @transform_4(%arg0: i32, %arg1: i32) -> (i32, i32, i32) {
    %c0_i32 = arith.constant 0 : i32
    %c0_i32_0 = arith.constant 0 : i32
    %c0_i32_1 = arith.constant 0 : i32
    return %arg1, %c0_i32, %c0_i32_0 : i32, i32, i32
  }
  func.func @transform_5(%arg0: i32, %arg1: i32) -> (i32, i32, i32) {
    %c0_i32 = arith.constant 0 : i32
    %c0_i32_0 = arith.constant 0 : i32
    %c0_i32_1 = arith.constant 0 : i32
    return %arg1, %c0_i32, %c0_i32_0 : i32, i32, i32
  }
  func.func @transform_6(%arg0: i32, %arg1: i32) -> (i32, i32, i32) {
    %c0_i32 = arith.constant 0 : i32
    %c0_i32_0 = arith.constant 0 : i32
    %c0_i32_1 = arith.constant 0 : i32
    return %arg1, %c0_i32, %c0_i32_0 : i32, i32, i32
  }
  func.func @transform_7(%arg0: i32, %arg1: i32) -> (i32, i32, i32) {
    %c0_i32 = arith.constant 0 : i32
    %c0_i32_0 = arith.constant 0 : i32
    %c0_i32_1 = arith.constant 0 : i32
    return %arg1, %c0_i32, %c0_i32_0 : i32, i32, i32
  }
  func.func @transform_8(%arg0: i32, %arg1: i32) -> (i32, i32, i32) {
    %c0_i32 = arith.constant 0 : i32
    %c0_i32_0 = arith.constant 0 : i32
    %c0_i32_1 = arith.constant 0 : i32
    return %arg1, %c0_i32, %c0_i32_0 : i32, i32, i32
  }
  func.func @transform_9(%arg0: i32, %arg1: i32) -> (i32, i32) {
    %c0_i32 = arith.constant 0 : i32
    %c0_i32_0 = arith.constant 0 : i32
    return %arg0, %c0_i32 : i32, i32
  }
}

</mosaic_0001>

<bundles_post_ra>
// kernel: tpu_custom_call.1
= control target key start
LH: loop header
LB: loop body
LE: loop exit
PB: predicated region body
PF: predicated region fallthrough
CT: control target
= control target key end

     0   :  { %s2024_s0 = inlined_call_operand.hbm [shape: f32[16,32], index: 0, kind: input, shape index: {}]   ;;  %s2025_s1 = inlined_call_operand.hbm [shape: f32[2,1,8], index: 1, kind: input, shape index: {}]   ;;  %s2026_s2 = inlined_call_operand.vmem [shape: f32[1,32], index: 2, kind: input, shape index: {}]   ;;  %s2027_s3 = inlined_call_operand.hbm [shape: f32[1,32], index: 3, kind: input, shape index: {}]   ;;  %s2028_s4 = inlined_call_operand.vmem [shape: bf16[2,32,96], index: 4, kind: input, shape index: {}]   ;;  %s2029_s5 = inlined_call_operand.vmem [shape: bf16[2,32,32], index: 5, kind: input, shape index: {}]   ;;  %s2030_s6 = inlined_call_operand.vmem [shape: bf16[2,32,64], index: 6, kind: input, shape index: {}]   ;;  %s2031_s7 = inlined_call_operand.vmem [shape: bf16[2,64,32], index: 7, kind: input, shape index: {}]   ;;  %s2032_s8 = inlined_call_operand.hbm [shape: f32[2,8,96], index: 8, kind: input, shape index: {}]   ;;  %s2033_s9 = inlined_call_operand.hbm [shape: f32[16,32], index: 9, kind: output, shape index: {}]  }
   0x1   :  { %2043 = sst [smem:[#allocation24_spill]] %s2024_s0 }
   0x2   :  { %2044 = sst [smem:[#allocation25_spill]] %s2025_s1 }
   0x3   :  { %2045 = sst [smem:[#allocation26_spill]] %s2026_s2 }
   0x4   :  { %2046 = sst [smem:[#allocation27_spill]] %s2027_s3 }
   0x5   :  { %2047 = sst [smem:[#allocation28_spill]] %s2030_s6 }
   0x6   :  { %2048 = sst [smem:[#allocation29_spill]] %s2031_s7 }
   0x7   :  { %2049 = sst [smem:[#allocation30_spill]] %s2032_s8 }
   0x8   :  { %2050 = sst [smem:[#allocation31_spill]] %s2033_s9 }
   0x9   :  { %14 = vsyncpa [#allocation3], 0 }
   0xa   :  { %16 = vsyncpa [#allocation3 + $0x1], 0 }
   0xb   :  { %17 = vsyncpa [#allocation6], 0 }
   0xc   :  { %19 = vsyncpa [#allocation6 + $0x1], 0 }
   0xd   :  { %20 = vsyncpa [#allocation9], 0 }
   0xe   :  { %22 = vsyncpa [#allocation9 + $0x1], 0 }
   0xf   :  { %23 = vsyncpa [#allocation4], 0 }
  0x10   :  { %25 = vsyncpa [#allocation4 + $0x1], 0  ;;  %s1700_s30 = smov 0   ;;  %s1702_s10 = smov 0  }
  0x11   :  { %s1704_s11 = smov 0   ;;  %s1706_s12 = smov 0  }
  0x12   :  { %s1708_s13 = smov 0   ;;  %s1710_s14 = smov 0  }
  0x13   :  { %s1712_s15 = smov 0   ;;  %s1714_s16 = smov 0  }
  0x14   :  { %s1716_s17 = smov 0   ;;  %s1718_s18 = smov 0  }
  0x15   :  { %s1720_s19 = smov 0  }
  0x16 LB: > { %2051 = sst [smem:[#allocation16_spill]] %s1612_s12  ;;  %s1756_s20 = sadd.s32 4294967295, %s1640_s19   ;;  %s1640_s19 = sphi %s1720_s19, %s31_s19   ;;  %s1636_s18 = sphi %s1718_s18, %s2083_s18   ;;  %s1632_s17 = sphi %s1716_s17, %s2082_s17   ;;  %s1628_s16 = sphi %s1714_s16, %s2081_s16   ;;  %s1624_s15 = sphi %s1712_s15, %s2080_s15   ;;  %s1620_s14 = sphi %s1710_s14, %s2089_s14   ;;  %s1616_s13 = sphi %s1708_s13, %s2088_s13   ;;  %s1612_s12 = sphi %s1706_s12, %s2087_s12   ;;  %s1608_s11 = sphi %s1704_s11, %s2086_s11   ;;  %s1604_s10 = sphi %s1702_s10, %s2085_s10   ;;  %s1600_s30 = sphi %s1700_s30, %s2084_s30  }
  0x17   : > { %2052 = sst [smem:[#allocation17_spill]] %s1628_s16  ;;  %p1145_p0 = scmp.ge.s32.totalorder %s1640_s19, 1 }
  0x18   : > { %2053 = sst [smem:[#allocation18_spill]] %s1632_s17  ;;  %p64_p1 = scmp.eq.s32.totalorder %s1756_s20, 0 }
  0x19   : > { %2054 = sst [smem:[#allocation19_spill]] %s1636_s18  ;;  %p298_p2 = scmp.lt.s32.totalorder %s1640_s19, 5 }
  0x1a   : > { %s2055_s3 = sld [smem:[#allocation27_spill]]  ;;  %p285_p3 = scmp.eq.s32.totalorder %s1756_s20, 3 }
  0x1b   : > { %p1765_p4 = pnand %p1145_p0, %p298_p2  ;;  %s1642_s25 = smov [#allocation7]  }
  0x1c   : > { %s315_s26 = sshll.u32 %s1642_s25, 4  ;;  %s1144_s27 = sadd.s32 4294967294, %s1640_s19   ;;  %s316_s26 = int_to_ptr.vmem [resolvable:$true] %s315_s26 }
  0x1d   : > { %p1245_p5 = pneg %p1765_p4  ;;  %p57_p7 = scmp.ne.s32.totalorder %s1620_s14, %s1616_s13 }
  0x1e   : > { %p58_p8 = scmp.eq.s32.totalorder %s1640_s19, 0  ;;  %p63_p9 = scmp.ne.s32.totalorder %s1616_s13, %s1612_s12 }
  0x1f   : > { %p1246_p6 = pnand %p1245_p5, %p64_p1  ;;  %p291_p10 = scmp.eq.s32.totalorder %s1144_s27, 3 }
  0x20   : > { %s313_s23 = sshll.u32 %s2055_s3, 4  ;;  %p1781_p11 = por %p58_p8, %p57_p7  ;;  %s314_s23 = int_to_ptr.hbm [resolvable:$true] %s313_s23 }
  0x21   : > { %1248 = dma.hbm_to_vmem [thread:$0]  (!%p1246_p6), %s314_s23, 16, %s316_s26, [#allocation6]  }
  0x22   : > { %p1787_p12 = por %p285_p3, %p57_p7  ;;  %p1793_p13 = por %p64_p1, %p63_p9 }
  0x23   : > { %p1797_p0 = por %p291_p10, %p63_p9  ;;  %p1264_p2 = scmp.lt.s32.totalorder %s1640_s19, 4 }
  0x24   : > { %s2058_s29 = scalar_select %p1787_p12, 1, 0 }
  0x25   : > { %s2061_s22 = scalar_select %p1797_p0, 1, 0 }
  0x26   : > { %2059 = sst [smem:[#allocation20_spill]] %s2058_s29  ;;  %s326_s23 = sand.u32 1, %s1620_s14  }
  0x27   : > { %2062 = sst [smem:[#allocation21_spill]] %s2061_s22  ;;  %s1148_s25 = sshll.u32 %s326_s23, 3 }
  0x28   : > { %s1149_s26 = sshll.u32 %s1636_s18, 3  ;;  %s2063_s0 = sld [smem:[#allocation24_spill]] }
  0x29   : > { %s330_s29 = scalar_lea.vmem [#allocation2], %s1148_s25  ;;  %p1250_p3 = pnand %p1264_p2, %p1781_p11 }
  0x2a   : > { %s338_s9 = sshll.u32 %s330_s29, 4  ;;  %s345_s22 = sand.u32 1, %s1640_s19   ;;  %s339_s9 = int_to_ptr.vmem [resolvable:$true] %s338_s9 }
  0x2b   : > { %s327_s2 = scalar_lea.sflag [#allocation3], %s326_s23  ;;  %s2064_s1 = sld [smem:[#allocation25_spill]] }
  0x2c   : > { %s50_s28 = sadd.s32 1, %s1620_s14  ;;  %s43_s6 = sadd.s32 1, %s1636_s18 }
  0x2d   : > { %s248_s7 = sadd.s32 1, %s1608_s11  ;;  %p255_p6 = scmp.ne.s32.totalorder %s1608_s11, %s1604_s10 }
  0x2e   : > { %s334_s12 = scalar_lea.hbm %s2063_s0, %s1149_s26  ;;  %s346_s26 = scalar_lea.sflag [#allocation6], %s345_s22 }
  0x2f   : > { %s336_s16 = sshll.u32 %s334_s12, 4  ;;  %s348_s12 = scalar_lea.vmem [#allocation5], %s326_s23  ;;  %s337_s16 = int_to_ptr.hbm [resolvable:$true] %s336_s16 }
  0x30   : > { %1252 = dma.hbm_to_vmem [thread:$0]  (!%p1250_p3), %s337_s16, 128, %s339_s9, %s327_s2  }
  0x31   : > { %s351_s3 = scalar_lea.hbm %s2064_s1, %s1636_s18  ;;  %s355_s29 = sshll.u32 %s348_s12, 4  ;;  %s356_s29 = int_to_ptr.vmem [resolvable:$true] %s355_s29 }
  0x32   : > { %s353_s25 = sshll.u32 %s351_s3, 4  ;;  %s40_s2 = sadd.s32 1, %s1632_s17  ;;  %s354_s25 = int_to_ptr.hbm [resolvable:$true] %s353_s25 }
  0x33   : > { %1255 = dma.hbm_to_vmem [thread:$0]  (!%p1250_p3), %s354_s25, 16, %s356_s29, %s346_s26  }
  0x34   : > { %p41_p5 = scmp.ge.s32.totalorder %s40_s2, 2  ;;  %p261_p10 = scmp.ne.s32.totalorder %s1604_s10, %s1600_s30 }
  0x35   : > { %s394_s16 = sand.u32 1, %s1608_s11   ;;  %s1151_s12 = sshll.u32 %s1632_s17, 3 }
  0x36   : > { %s2091_s2 = smov (%p41_p5, %s40_s2), 0  ;;  %s2093_s6 = smov (!%p41_p5, %s43_s6), %s1636_s18 }
  0x37   : > { %2065 = sst [smem:[#allocation22_spill]] %s2091_s2  ;;  %s245_s9 = ssub.s32 %s1632_s17, %s2091_s2 }
  0x38   : > { %p45_p7 = scmp.ge.s32.totalorder %s2093_s6, 2  ;;  %p246_p9 = scmp.eq.s32.totalorder %s245_s9, 0 }
  0x39   : > { %p1839_p11 = por %p261_p10, %p64_p1  ;;  %p257_p5 = por %p255_p6, %p58_p8 }
  0x3a   : > { %s2095_s6 = smov (%p45_p7, %s2093_s6), 0  ;;  %s1150_s3 = sshll.u32 %s394_s16, 3 }
  0x3b   : > { %2066 = sst [smem:[#allocation23_spill]] %s2095_s6  ;;  %s47_s23 = ssub.s32 %s1636_s18, %s2095_s6 }
  0x3c   : > { %s1833_s22 = scalar_select %p246_p9, %s1608_s11, %s248_s7  }
  0x3d   : > { %p48_p3 = scmp.eq.s32.totalorder %s47_s23, 0  ;;  %s2068_s8 = sld [smem:[#allocation30_spill]] }
  0x3e   : > { %s398_s7 = scalar_lea.vmem [#allocation8], %s1150_s3  ;;  %p1256_p7 = pnand %p1264_p2, %p257_p5 }
  0x3f   : > { %s1847_s29 = scalar_select %p48_p3, %s1620_s14, %s50_s28  }
  0x40   : > { %s406_s0 = sshll.u32 %s398_s7, 4  ;;  %s395_s1 = scalar_lea.sflag [#allocation9], %s394_s16  ;;  %s407_s0 = int_to_ptr.vmem [resolvable:$true] %s406_s0 }
  0x41   : > { %415 = sbr.rel (%p1765_p4) target bundleno = 1776 (0x6f0), region = 56  ;;  %s1857_s28 = sand.u32 (!%p1765_p4), 1, %s1616_s13  }
  0x42   : > { %s1153_s23 = sshll.u32 (!%p1765_p4), %s1857_s28, 3 }
  0x43   : > { %s402_s26 = scalar_lea.hbm %s2068_s8, %s1151_s12  ;;  %s418_s12 = scalar_lea.sflag (!%p1765_p4), [#allocation3], %s1857_s28 }
  0x44   : > { %s404_s9 = sshll.u32 %s402_s26, 4  ;;  %s421_s30 = scalar_lea.vmem (!%p1765_p4), [#allocation2], %s1153_s23  ;;  %s405_s9 = int_to_ptr.hbm [resolvable:$true] %s404_s9 }
  0x45   : > { %1258 = dma.hbm_to_vmem [thread:$0]  (!%p1256_p7), %s405_s9, 128, %s407_s0, %s395_s1  }
  0x46   : > { %1579 = dma.done.wait (%p1793_p13), %s418_s12, 128  }
  0x47   : > { %1581 = vsyncadd (%p1793_p13), %s418_s12, 4294967168  ;;  %s427_s0 = sand.u32 1, %s1756_s20  }
  0x48   : > { %s428_s1 = scalar_lea.sflag [#allocation6], %s427_s0 }
  0x49   : > { %1583 = dma.done.wait (%p1793_p13), %s428_s1, 16  }
  0x4a   : > { %1585 = vsyncadd (%p1793_p13), %s428_s1, 4294967280 }
  0x4b   : > { %1587 = dma.done.wait (%p64_p1), [#allocation6], 16  }
  0x4c   : > { %1589 = vsyncadd (%p64_p1), [#allocation6], 4294967280  ;;  %s441_s16 = sand.u32 1, %s1604_s10  }
  0x4d   : > { %s1876_s3 = sshll.u32 %s441_s16, 3  ;;  %s442_s25 = scalar_lea.sflag [#allocation9], %s441_s16 }
  0x4e   : > { %1591 = dma.done.wait (%p1839_p11), %s442_s25, 128  }
  0x4f   : > { %1593 = vsyncadd (%p1839_p11), %s442_s25, 4294967168  ;;  %p510_p4 = scmp.lt.s32.totalorder %s1624_s15, 1  ;;  %s2069_s27 = sld [smem:[#allocation28_spill]] }
  0x50   : > { %s2070_s18 = sld [smem:[#allocation29_spill]]  ;;  %p1165_p1 = scmp.ne.s32.totalorder %s1624_s15, 0 }
  0x51   : > { %s511_s21 = scalar_select %p510_p4, %s1624_s15, 1 }
  0x52   : > { %534 = sbr.rel (%p1165_p1) target bundleno = 244 (0xf4), region = 76 }
  0x53   : > { %s1219_s9 = sshll.u32 %s511_s21, 4  ;;  %s1222_s20 = sshll.u32 %s511_s21, 5 }
  0x54   : > { %s1888_s0 = scalar_lea.vmem %s2028_s4, %s1219_s9  ;;  %s1893_s16 = scalar_lea.vmem %s2029_s5, %s1219_s9 }
  0x55   : > { %s1898_s25 = scalar_lea.vmem %s2069_s27, %s1219_s9  ;;  %s1905_s21 = scalar_lea.vmem [#allocation10], %s1153_s23 }
  0x56   : > { %s1903_s17 = scalar_lea.vmem %s2070_s18, %s1222_s20  ;;  %s2071_s18 = sld [smem:[#allocation26_spill]] (!%p1165_p1) }
  0x57   : > { %v535_v0 = vld [vmem:[%s421_s30] sm:$0xff]  ;;  %vm538_vm0 = vcmask 261120   ;;  %v1643_v4 = vmov 32.0   ;;  %v1364_v27 = vld [vmem:[#allocation7] ss:$0 sm:$0xff] }
  0x58   : > { %v539_v1 = vsel %vm538_vm0, %v535_v0, 0.0  ;;  %v550_v2 = vmul.f32 %v535_v0, %v535_v0  ;;  %1365 = vrcp.f32 %v1643_v4 }
  0x59   : > { %540 = vadd.xlane.f32.xlu0 %v539_v1 }
  0x5a   : > { %v551_v3 = vsel %vm538_vm0, %v550_v2, 0.0 }
  0x5c   : > { %v1363_v25 = vld [vmem:[%s2071_s18] ss:$0 sm:$0xff] }
  0x5e   : > { %v1366_v5 = vpop.eup %1365 }
  0x5f   : > { %v543_v6 = vmul.f32 32.0, %v1366_v5  ;;  %vm547_vm1 = vweird.f32 %v1366_v5 }
  0x61   : > { %552 = vadd.xlane.f32.xlu0 %v551_v3  ;;  %v544_v7 = vsub.f32 1.0, %v543_v6 }
  0x63   : > { %v545_v8 = vmul.f32 %v1366_v5, %v544_v7 }
  0x65   : > { %v546_v9 = vadd.f32 %v1366_v5, %v545_v8 }
  0x67   : > { %v548_v11 = vsel %vm547_vm1, %v1366_v5, %v546_v9 }
  0xcc   : > { %v541_v10 = vpop.xlane.xlu0 %540 }
  0xcd   : > { %v549_v12 = vmul.f32 %v548_v11, %v541_v10 }
  0xcf   : > { %v555_v14 = vmul.f32 %v549_v12, %v549_v12  ;;  %v557_v24 = vsub.f32 %v535_v0, %v549_v12 }
  0xd4   : > { %v553_v13 = vpop.xlane.xlu0 %552 }
  0xd5   : > { %v554_v15 = vmul.f32 %v553_v13, %v548_v11 }
  0xd7   : > { %v556_v16 = vsub.f32 %v554_v15, %v555_v14 }
  0xd9   : > { %v558_v17 = vadd.f32 1e-12, %v556_v16 }
  0xdb   : > { %1367 = vrsqrt.f32 %v558_v17  ;;  %vm565_vm3 = vweird.f32 %v558_v17 }
  0xe1   : > { %v1368_v18 = vpop.eup %1367 }
  0xe2   : > { %v560_v19 = vmul.f32 %v1368_v18, %v558_v17  ;;  %vm566_vm2 = vweird.f32 %v1368_v18 }
  0xe3   : > { %vm567_vm4 = vmor %vm565_vm3, %vm566_vm2 }
  0xe4   : > { %v561_v20 = vmul.f32 %v1368_v18, %v560_v19 }
  0xe6   : > { %v562_v21 = vmul.f32 0.5, %v561_v20 }
  0xe8   : > { %v563_v22 = vsub.f32 1.5, %v562_v21 }
  0xea   : > { %v564_v23 = vmul.f32 %v1368_v18, %v563_v22 }
  0xec   : > { %v568_v26 = vsel %vm567_vm4, %v1368_v18, %v564_v23 }
  0xed   : > { %v569_v28 = vmul.f32 %v568_v26, %v557_v24 }
  0xef   : > { %v573_v29 = vmul.f32 %v1363_v25, %v569_v28 }
  0xf1   : > { %v577_v30 = vadd.f32 %v1364_v27, %v573_v29 }
  0xf3   : > { %578 = vst.msk [vmem:[%s1905_s21] sm:$0xff] %vm538_vm0, %v577_v30 }
  0xf4 PF: > { %v1224_v31 = vld [vmem:[%s1888_s0 + $0x8] sm:$0xff]  ;;  %v1223_v32 = vld [vmem:[%s1888_s0] sm:$0xff]  ;;  %vm599_vm5 = vcmask 261120   ;;  %s2072_s2 = scalar_lea.vmem [#allocation8], %s1876_s3  ;;  %s1644_s6 = smov 112   ;;  %vm628_vm6 = vcmask 130048  }
  0xf5   : > { %609 = vmatpush.bf16.msra.mxu0 %v1224_v31  ;;  %v1925_v35 = vld [vmem:[%s2072_s2] sm:$0xff]  ;;  %s1645_s23 = smov 96   ;;  %s1646_s30 = smov 80   ;;  %vm666_vm7 = vcmask 1043456   ;;  %vm648_vm8 = vcmask 64512   ;;  %v1226_v14 = vld [vmem:[%s1893_s16 + $0x8] sm:$0xff] }
  0xf6   : > { %v586_v36 = vperm.slane %v1925_v35, 0  ;;  %s1647_s24 = smov 64   ;;  %s1648_s26 = smov 48   ;;  %v1225_v13 = vld [vmem:[%s1893_s16] sm:$0xff]  ;;  %v785_v23 = vperm.slane %v1925_v35, 2  ;;  %vm900_vm13 = vcmask 523264  }
  0xf7   : > { %s2073_s3 = scalar_lea.vmem [#allocation5], %s1857_s28  ;;  %s2075_s12 = sld [smem:[#allocation31_spill]] }
  0xf8   : > { %v1369_v50 = vld [vmem:[%s2073_s3] ss:$0 sm:$0xff]  ;;  %s960_s27 = sshll.u32 %s1905_s21, 4  ;;  %s948_s8 = scalar_lea.sflag [#allocation4], %s1857_s28  ;;  %s961_s27 = int_to_ptr.vmem [resolvable:$true] %s960_s27 }
  0xf9   : > { %610 = vmatpush.bf16.msra.mxu0 %v1223_v32  ;;  %v1649_v32 = vmov 32.0  }
  0xfa   : > { %v1918_v33 = vld [vmem:[%s1905_s21] sm:$0xff] }
  0xfb   : > { %v581_v34 = vpack.c.bf16 %v1918_v33, %v1918_v33 }
  0xfd   : > { %1174 = vmatmul.msk.bf16.vlgmr.msra.gmra.mxu0 %vm599_vm5, %v581_v34  ;;  %s2076_s0 = smov %s2075_s12 }
  0xfe   : > { %757 = vmatpush.bf16.msrb.mxu0 %v1226_v14 }
 0x17a   : > { %v612_v37 = vpop.f32.mrf.mxu0 }
 0x17b   : > { %v613_v38 = vadd.f32 %v612_v37, %v586_v36 }
 0x17d   : > { %v621_v39 = vpack.c.bf16 %v613_v38, %v613_v38 }
 0x17f   : > { %684 = vrot.lane.b32.xlu1 %v621_v39, %s1644_s6  ;;  %626 = vrot.lane.b32.xlu0 %v621_v39, %s1645_s23  ;;  %s1526_s23 = scalar_lea.hbm %s2076_s0, 16 }
 0x182   : > { %v614_v40 = vpop.f32.mrf.mxu0 }
 0x183   : > { %v1228_v40 = vld [vmem:[%s1898_s25 + $0x8] sm:$0xff] }
 0x187   : > { %686 = vrot.lane.b32.xlu0 %v621_v39, %s1646_s30 }
 0x18f   : > { %661 = vrot.lane.b32.xlu0 %v621_v39, %s1647_s24 }
 0x197   : > { %719 = vrot.lane.b32.xlu0 %v621_v39, %s1648_s26 }
 0x1f1   : > { %v627_v41 = vpop.permute.xlu0 %626  ;;  %v685_v45 = vpop.permute.xlu1 %684 }
 0x1f2   : > { %v633_v42 = vsel %vm628_vm6, %v627_v41, 0 }
 0x1f3   : > { %642 = vmatpush.bf16.xpose.msra.mxu1 %v633_v42 }
 0x1f9   : > { %v687_v43 = vpop.permute.xlu0 %686 }
 0x1fa   : > { %1175 = vmatmul.msk.bf16.vlgmr.msra.gmra.mxu1 %vm628_vm6, %v621_v39  ;;  %v692_v44 = vsel %vm628_vm6, %v687_v43, 0 }
 0x1fb   : > { %701 = vmatpush.bf16.xpose.msra.mxu3 %v692_v44  ;;  %779 = vmatpush.bf16.msrb.mxu1 %v1225_v13 }
 0x201   : > { %v662_v46 = vpop.permute.xlu0 %661 }
 0x202   : > { %1177 = vmatmul.msk.bf16.vlgmr.msra.gmra.mxu3 %vm628_vm6, %v685_v45  ;;  %v668_v47 = vsel %vm666_vm7, %v662_v46, 0 }
 0x203   : > { %677 = vmatpush.bf16.msra.mxu2 %v668_v47  ;;  %850 = vmatpush.bf16.msrb.mxu3 %v1228_v40 }
 0x209   : > { %v720_v48 = vpop.permute.xlu0 %719 }
 0x20a   : > { %v725_v49 = vsel %vm666_vm7, %v720_v48, 0 }
 0x20b   : > { %734 = vmatpush.bf16.msrb.mxu2 %v725_v49 }
 0x277   : > { %v644_v51 = vpop.f32.mrf.mxu1 }
 0x278   : > { %v645_v52 = vadd.f32 %v1369_v50, %v644_v51 }
 0x27a   : > { %v649_v53 = vsel %vm648_vm8, %v645_v52, -inf }
 0x27b   : > { %650 = vmax.xlane.f32.xlu1 %v649_v53 }
 0x27f   : > { %v646_v54 = vpop.f32.mrf.mxu1 }
 0x285   : > { %v703_v55 = vpop.f32.mrf.mxu3 }
 0x286   : > { %v704_v56 = vadd.f32 %v1369_v50, %v703_v55 }
 0x288   : > { %v707_v57 = vsel %vm648_vm8, %v704_v56, -inf }
 0x289   : > { %708 = vmax.xlane.f32.xlu2 %v707_v57 }
 0x28d   : > { %v705_v58 = vpop.f32.mrf.mxu3 }
 0x2ee   : > { %v651_v59 = vpop.xlane.xlu1 %650 }
 0x2ef   : > { %v652_v60 = vsub.f32 %v645_v52, %v651_v59  ;;  %v821_v59 = vperm.slane %v1925_v35, 4 }
 0x2f1   : > { %v653_v61 = vmul.f32 1.442695, %v652_v60 }
 0x2f3   : > { %1370 = vpow2.f32 %v653_v61 }
 0x2f9   : > { %v1371_v62 = vpop.eup %1370 }
 0x2fa   : > { %v655_v63 = vsel %vm648_vm8, %v1371_v62, 0.0 }
 0x2fb   : > { %656 = vadd.xlane.f32.xlu2 %v655_v63  ;;  %v1232_v63 = vld [vmem:[%s1903_s17 + $0x18] sm:$0xff] }
 0x2fc   : > { %v709_v0 = vpop.xlane.xlu2 %708 }
 0x2fd   : > { %v710_v1 = vsub.f32 %v704_v56, %v709_v0  ;;  %v819_v56 = vperm.slane %v1925_v35, 3  ;;  %v1231_v0 = vld [vmem:[%s1903_s17 + $0x10] sm:$0xff] }
 0x2ff   : > { %v711_v2 = vmul.f32 1.442695, %v710_v1  ;;  %v1230_v1 = vld [vmem:[%s1903_s17 + $0x8] sm:$0xff] }
 0x301   : > { %1372 = vpow2.f32 %v711_v2  ;;  %v1229_v2 = vld [vmem:[%s1903_s17] sm:$0xff]  ;;  %s2074_s17 = sld [smem:[#allocation17_spill]] }
 0x307   : > { %v1373_v3 = vpop.eup %1372  ;;  %s1216_s9 = sshll.u32 %s2074_s17, 3 }
 0x308   : > { %v713_v4 = vsel %vm648_vm8, %v1373_v3, 0.0  ;;  %s958_s1 = scalar_lea.hbm %s2075_s12, %s1216_s9 }
 0x309   : > { %714 = vadd.xlane.f32.xlu2 %v713_v4 }
 0x36e   : > { %v657_v5 = vpop.xlane.xlu2 %656 }
 0x36f   : > { %1374 = vrcp.f32 %v657_v5 }
 0x375   : > { %v1375_v6 = vpop.eup %1374 }
 0x376   : > { %v659_v7 = vmul.f32 %v1375_v6, %v1371_v62 }
 0x378   : > { %v660_v8 = vpack.c.bf16 %v659_v7, %v659_v7 }
 0x37a   : > { %1176 = vmatmul.msk.bf16.vlgmr.msra.gmra.mxu2 %vm648_vm8, %v660_v8 }
 0x37b   : > { %908 = vmatpush.bf16.msra.mxu2 %v1232_v63 }
 0x37c   : > { %v715_v9 = vpop.xlane.xlu2 %714 }
 0x37d   : > { %1376 = vrcp.f32 %v715_v9 }
 0x37e   : > { %1378 = vrcp.f32 %v1649_v32 }
 0x37f   : > { %909 = vmatpush.bf16.msra.mxu2 %v1231_v0 }
 0x383   : > { %v1377_v10 = vpop.eup %1376  ;;  %910 = vmatpush.bf16.msra.mxu2 %v1230_v1 }
 0x384   : > { %v717_v11 = vmul.f32 %v1377_v10, %v1373_v3  ;;  %v1379_v34 = vpop.eup %1378  ;;  %v828_v3 = vperm.slane %v1925_v35, 1 }
 0x385   : > { %v792_v36 = vmul.f32 32.0, %v1379_v34  ;;  %vm796_vm9 = vweird.f32 %v1379_v34 }
 0x386   : > { %v718_v12 = vpack.c.bf16 %v717_v11, %v717_v11 }
 0x387   : > { %v793_v37 = vsub.f32 1.0, %v792_v36  ;;  %911 = vmatpush.bf16.msra.mxu2 %v1229_v2 }
 0x389   : > { %v794_v38 = vmul.f32 %v1379_v34, %v793_v37 }
 0x38a   : > { %1178 = vmatmul.msk.bf16.vlgmr.msrb.gmra.mxu2 %vm648_vm8, %v718_v12 }
 0x38b   : > { %v795_v39 = vadd.f32 %v1379_v34, %v794_v38 }
 0x38d   : > { %v1950_v41 = vsel %vm796_vm9, %v1379_v34, %v795_v39 }
 0x3fd   : > { %v679_v15 = vpop.f32.mrf.mxu2 }
 0x3fe   : > { %v683_v16 = vpack.c.bf16 %v679_v15, %v679_v15 }
 0x400   : > { %1188 = vmatmul.msk.bf16.vlgmr.msrb.gmra.mxu1 %vm628_vm6, %v683_v16 }
 0x405   : > { %v681_v17 = vpop.f32.mrf.mxu2 }
 0x406   : > { %v875_v17 = vperm.slane %v1925_v35, 5 }
 0x40d   : > { %v736_v18 = vpop.f32.mrf.mxu2 }
 0x40e   : > { %v740_v19 = vpack.c.bf16 %v736_v18, %v736_v18 }
 0x410   : > { %1183 = vmatmul.msk.bf16.vlgmr.msrb.gmra.mxu0 %vm628_vm6, %v740_v19 }
 0x415   : > { %v738_v20 = vpop.f32.mrf.mxu2 }
 0x47d   : > { %v781_v21 = vpop.f32.mrf.mxu1 }
 0x485   : > { %v783_v22 = vpop.f32.mrf.mxu1 }
 0x48d   : > { %v759_v24 = vpop.f32.mrf.mxu0 }
 0x48e   : > { %v782_v25 = vadd.f32 %v781_v21, %v759_v24 }
 0x490   : > { %v786_v26 = vadd.f32 %v785_v23, %v782_v25 }
 0x492   : > { %v787_v27 = vadd.f32 %v786_v26, %v1918_v33  ;;  %v1227_v33 = vld [vmem:[%s1898_s25] sm:$0xff]  ;;  %s962_s25 = sshll.u32 %s958_s1, 4  ;;  %s963_s25 = int_to_ptr.hbm [resolvable:$true] %s962_s25 }
 0x493   : > { %851 = vmatpush.bf16.msrb.mxu3 %v1227_v33  ;;  %v942_v33 = vperm.slane %v1925_v35, 6  ;;  %s1520_s15 = sshra.s32 %s963_s25, 4  ;;  %s1521_s15 = int_to_ptr.hbm [resolvable:$true] %s1520_s15 }
 0x494   : > { %v788_v28 = vsel %vm599_vm5, %v787_v27, 0.0  ;;  %v799_v29 = vmul.f32 %v787_v27, %v787_v27  ;;  %s1522_s18 = scalar_lea.hbm %s1521_s15, 8  ;;  %p1527_p6 = scmp.lt.s32.totalorder %s1521_s15, %s2076_s0 }
 0x495   : > { %789 = vadd.xlane.f32.xlu2 %v788_v28  ;;  %v761_v30 = vpop.f32.mrf.mxu0  ;;  %p1523_p8 = scmp.ne.s32.totalorder %s1521_s15, %s1522_s18  ;;  %p1528_p9 = scmp.lt.s32.totalorder %s1526_s23, %s1522_s18 }
 0x496   : > { %v800_v31 = vsel %vm599_vm5, %v799_v29, 0.0 }
 0x497   : > { %801 = vadd.xlane.f32.xlu0 %v800_v31  ;;  %p1524_p13 = pnand %p1523_p8, %p1787_p12  ;;  %p1529_p10 = por %p1528_p9, %p1527_p6 }
 0x499   : > { %p1525_p2 = pneg %p1524_p13 }
 0x49b   : > { %p1530_p11 = pnand %p1529_p10, %p1525_p2 }
 0x508   : > { %v790_v42 = vpop.xlane.xlu2 %789 }
 0x509   : > { %v798_v43 = vmul.f32 %v1950_v41, %v790_v42 }
 0x50a   : > { %v802_v44 = vpop.xlane.xlu0 %801 }
 0x50b   : > { %v804_v45 = vmul.f32 %v798_v43, %v798_v43  ;;  %v803_v46 = vmul.f32 %v802_v44, %v1950_v41  ;;  %v806_v55 = vsub.f32 %v787_v27, %v798_v43  ;;  %v944_v43 = vperm.slane %v1925_v35, 7 }
 0x50d   : > { %v805_v47 = vsub.f32 %v803_v46, %v804_v45 }
 0x50f   : > { %v807_v48 = vadd.f32 1e-12, %v805_v47 }
 0x511   : > { %1380 = vrsqrt.f32 %v807_v48  ;;  %vm814_vm11 = vweird.f32 %v807_v48 }
 0x517   : > { %v1381_v49 = vpop.eup %1380 }
 0x518   : > { %v809_v50 = vmul.f32 %v1381_v49, %v807_v48  ;;  %vm815_vm10 = vweird.f32 %v1381_v49 }
 0x519   : > { %vm816_vm12 = vmor %vm814_vm11, %vm815_vm10 }
 0x51a   : > { %v810_v51 = vmul.f32 %v1381_v49, %v809_v50 }
 0x51c   : > { %v811_v52 = vmul.f32 0.5, %v810_v51 }
 0x51e   : > { %v812_v53 = vsub.f32 1.5, %v811_v52 }
 0x520   : > { %v813_v54 = vmul.f32 %v1381_v49, %v812_v53 }
 0x522   : > { %v817_v57 = vsel %vm816_vm12, %v1381_v49, %v813_v54 }
 0x523   : > { %v818_v58 = vmul.f32 %v817_v57, %v806_v55 }
 0x525   : > { %v820_v60 = vmul.f32 %v819_v56, %v818_v58 }
 0x527   : > { %v822_v61 = vadd.f32 %v821_v59, %v820_v60 }
 0x529   : > { %v823_v62 = vpack.c.bf16 %v822_v61, %v822_v61 }
 0x52b   : > { %1197 = vmatmul.msk.bf16.vlgmr.msrb.gmra.mxu3 %vm599_vm5, %v823_v62 }
 0x5ae   : > { %v853_v4 = vpop.f32.mrf.mxu3 }
 0x5af   : > { %v854_v5 = vadd.f32 %v853_v4, %v828_v3 }
 0x5b1   : > { %v857_v6 = vmul.f32 %v854_v5, %v854_v5 }
 0x5b3   : > { %v858_v7 = vmul.f32 %v857_v6, %v854_v5 }
 0x5b5   : > { %v859_v8 = vmul.f32 0.044715, %v858_v7 }
 0x5b6   : > { %v855_v9 = vpop.f32.mrf.mxu3 }
 0x5b7   : > { %v860_v10 = vadd.f32 %v859_v8, %v854_v5 }
 0x5b9   : > { %v861_v11 = vmul.f32 0.7978846, %v860_v10 }
 0x5bb   : > { %1382 = vtanh.f32 %v861_v11 }
 0x5c1   : > { %v1383_v12 = vpop.eup %1382 }
 0x5c2   : > { %v863_v13 = vadd.f32 1.0, %v1383_v12 }
 0x5c4   : > { %v864_v14 = vmul.f32 0.5, %v863_v13 }
 0x5c6   : > { %v865_v15 = vmul.f32 %v864_v14, %v854_v5 }
 0x5c8   : > { %v866_v16 = vpack.c.bf16 %v865_v15, %v865_v15 }
 0x5ca   : > { %1214 = vmatmul.msk.bf16.vlgmr.msra.gmra.mxu2 %vm900_vm13, %v866_v16 }
 0x64d   : > { %v913_v18 = vpop.f32.mrf.mxu2 }
 0x64e   : > { %v914_v19 = vadd.f32 %v913_v18, %v875_v17 }
 0x650   : > { %v917_v20 = vadd.f32 %v914_v19, %v822_v61 }
 0x652   : > { %v918_v21 = vsel %vm599_vm5, %v917_v20, 0.0  ;;  %v922_v23 = vmul.f32 %v917_v20, %v917_v20 }
 0x653   : > { %919 = vadd.xlane.f32.xlu2 %v918_v21 }
 0x654   : > { %v923_v24 = vsel %vm599_vm5, %v922_v23, 0.0 }
 0x655   : > { %v915_v22 = vpop.f32.mrf.mxu2 }
 0x65b   : > { %924 = vadd.xlane.f32.xlu2 %v923_v24 }
 0x6c6   : > { %v920_v25 = vpop.xlane.xlu2 %919 }
 0x6c7   : > { %v921_v26 = vmul.f32 %v920_v25, %v1950_v41 }
 0x6c9   : > { %v927_v28 = vmul.f32 %v921_v26, %v921_v26  ;;  %v929_v40 = vsub.f32 %v917_v20, %v921_v26 }
 0x6ce   : > { %v925_v27 = vpop.xlane.xlu2 %924 }
 0x6cf   : > { %v926_v29 = vmul.f32 %v925_v27, %v1950_v41 }
 0x6d1   : > { %v928_v30 = vsub.f32 %v926_v29, %v927_v28 }
 0x6d3   : > { %v930_v31 = vadd.f32 1e-12, %v928_v30 }
 0x6d5   : > { %1384 = vrsqrt.f32 %v930_v31  ;;  %vm937_vm15 = vweird.f32 %v930_v31 }
 0x6db   : > { %v1385_v32 = vpop.eup %1384 }
 0x6dc   : > { %v932_v34 = vmul.f32 %v1385_v32, %v930_v31  ;;  %vm938_vm14 = vweird.f32 %v1385_v32 }
 0x6dd   : > { %vm939_vm0 = vmor %vm937_vm15, %vm938_vm14 }
 0x6de   : > { %v933_v36 = vmul.f32 %v1385_v32, %v932_v34 }
 0x6e0   : > { %v934_v37 = vmul.f32 0.5, %v933_v36 }
 0x6e2   : > { %v935_v38 = vsub.f32 1.5, %v934_v37 }
 0x6e4   : > { %v936_v39 = vmul.f32 %v1385_v32, %v935_v38 }
 0x6e6   : > { %v940_v41 = vsel %vm939_vm0, %v1385_v32, %v936_v39 }
 0x6e7   : > { %v941_v42 = vmul.f32 %v940_v41, %v929_v40 }
 0x6e9   : > { %v943_v44 = vmul.f32 %v942_v33, %v941_v42 }
 0x6eb   : > { %v945_v45 = vadd.f32 %v944_v43, %v943_v44 }
 0x6ed   : > { %946 = vst.msk [vmem:[%s1905_s21] sm:$0xff] %vm599_vm5, %v945_v45 }
 0x6ee   : > { %1533 = shalt.err (!%p1530_p11)
}
 0x6ef   : > { %1243 = dma.vmem_to_hbm [thread:$0]  (%p1787_p12), %s961_s27, 128, %s963_s25, %s948_s8  }
 0x6f0 PF: > { %s2078_s28 = sld [smem:[#allocation16_spill]]  ;;  %p1266_p3 = scmp.ge.s32.totalorder %s1640_s19, 2 }
 0x6f2   : > { %p1260_p5 = pnand %p1266_p3, %p1797_p0 }
 0x6f4   : > { %p1261_p7 = pneg %p1260_p5 }
 0x6f6   : > { %s974_s26 = sand.u32 1, %s2078_s28  }
 0x6f7   : > { %s975_s3 = scalar_lea.sflag [#allocation4], %s974_s26 }
 0x6f8   : > { %1595 = dma.done.wait (%p1261_p7), %s975_s3, 128  }
 0x6f9   : > { %1597 = vsyncadd (%p1261_p7), %s975_s3, 4294967168  ;;  %s31_s19 = sadd.s32 1, %s1640_s19   ;;  %s2080_s15 = sld [smem:[#allocation18_spill]] }
 0x6fa   : > { %p28_p4 = scmp.ge.s32.totalorder %s31_s19, 6   ;;  %s2081_s16 = sld [smem:[#allocation19_spill]] }
 0x6fb   : > { %s2082_s17 = sld [smem:[#allocation22_spill]]  ;;  %s2084_s30 = smov %s1604_s10 }
 0x6fc   : > { %s2083_s18 = sld [smem:[#allocation23_spill]]  ;;  %s2085_s10 = smov %s1608_s11 }
 0x6fd   : > { %s2086_s11 = smov %s1833_s22  ;;  %s2087_s12 = smov %s1616_s13 }
 0x6fe   : > { %s2088_s13 = smov %s1620_s14  ;;  %s2089_s14 = smov %s1847_s29 }
 0x6ff   :  { %30 = sbr.rel (!%p28_p4) target bundleno = 22 (0x16), region = 147 }
 0x704   :  { %981 = vsyncpa [#allocation3], 1 }
 0x705   :  { %983 = vsyncpa [#allocation3 + $0x1], 1 }
 0x706   :  { %984 = vsyncpa [#allocation6], 1 }
 0x707   :  { %986 = vsyncpa [#allocation6 + $0x1], 1 }
 0x708   :  { %987 = vsyncpa [#allocation9], 1 }
 0x709   :  { %989 = vsyncpa [#allocation9 + $0x1], 1 }
 0x70a   :  { %990 = vsyncpa [#allocation4], 1 }
 0x70b   :  { %992 = vsyncpa [#allocation4 + $0x1], 1 }

</bundles_post_ra>
